<compile_context>
chip_gen: v7x
topology: tpu7x:2x2x1
jax: 0.10.0
libtpu: 0.0.40
codegen_flags: <defaults>
</compile_context>

<pallas_src>
import functools

import jax
import jax.numpy as jnp
from jax.experimental import pallas as pl
from jax.experimental.pallas import tpu as pltpu


_NCORES = 2  # leading "parallel" grid axis -> 2-TC split on v7x, serial elsewhere


def _silog_partials_kernel(est_ref, gt_ref, mask_ref, out_ref, *,
                           rows, tile_rows, blocks_per_core, need_row_mask):
    c = pl.program_id(0)   # core / parallel axis
    j = pl.program_id(1)   # reduction axis (arbitrary)

    @pl.when(j == 0)
    def _():
        out_ref[...] = jnp.zeros_like(out_ref)

    m = mask_ref[...] != 0
    if need_row_mask:
        # Kill contributions from rows past the end of the array (partial edge
        # blocks) and from duplicated clamped blocks (intended base >= rows).
        base = (c * blocks_per_core + j) * tile_rows
        row_ids = base + jax.lax.broadcasted_iota(
            jnp.int32, (tile_rows, 128), 0)
        m = jnp.logical_and(m, row_ids < rows)

    est = jnp.where(m, est_ref[...].astype(jnp.float32), 1.0)
    gt = jnp.where(m, gt_ref[...].astype(jnp.float32), 1.0)
    d = jnp.log(est) - jnp.log(gt)          # exactly 0 where masked (log 1 = 0)

    # Lane-dense per-lane partials; only the sublane reduce happens per step.
    out_ref[0:1, :] += jnp.sum(d, axis=0, keepdims=True)
    out_ref[1:2, :] += jnp.sum(d * d, axis=0, keepdims=True)
    out_ref[2:3, :] += jnp.sum(m.astype(jnp.float32), axis=0, keepdims=True)


def silog_loss(depth_est, depth_gt, mask,
               silog_loss_weight=1.0, alpha_image_loss=0.85,
               depth_min_eval=1e-3, tile_rows=1024):
    # depth_min_eval is unused in the PyTorch forward; kept for interface parity.
    del depth_min_eval

    est = jnp.asarray(depth_est).reshape(-1)           # keep native dtype
    gt = jnp.asarray(depth_gt).reshape(-1)
    msk = (jnp.asarray(mask).reshape(-1) != 0).astype(jnp.int8)

    n = est.shape[0]
    rows_raw = -(-n // 128)                             # cdiv(n, 128)
    # tile must be a multiple of 32 sublanes (int8 mask tiling), and the array
    # must cover at least one full block.
    tile_req = max(32, ((int(tile_rows) + 31) // 32) * 32)
    tile_eff = min(tile_req, ((rows_raw + 31) // 32) * 32)
    rows = max(rows_raw, tile_eff)

    pad = rows * 128 - n
    if pad:  # only for tiny / ragged inputs; zero-copy in the common case
        est = jnp.pad(est, (0, pad), constant_values=1)
        gt = jnp.pad(gt, (0, pad), constant_values=1)
        msk = jnp.pad(msk, (0, pad), constant_values=0)

    est = est.reshape(rows, 128)
    gt = gt.reshape(rows, 128)
    msk = msk.reshape(rows, 128)

    nblocks = -(-rows // tile_eff)
    bpc = -(-nblocks // _NCORES)                        # blocks per core
    need_row_mask = (_NCORES * bpc * tile_eff) > rows

    def in_map(c, j):
        b = c * bpc + j
        if need_row_mask:
            b = jnp.minimum(b, nblocks - 1)             # never DMA fully OOB
        return (b, 0)

    kernel = functools.partial(
        _silog_partials_kernel, rows=rows, tile_rows=tile_eff,
        blocks_per_core=bpc, need_row_mask=need_row_mask)

    partials = pl.pallas_call(
        kernel,
        out_shape=jax.ShapeDtypeStruct((_NCORES, 3, 128), jnp.float32),
        grid_spec=pltpu.PrefetchScalarGridSpec(
            num_scalar_prefetch=0,
            grid=(_NCORES, bpc),
            in_specs=[
                pl.BlockSpec((tile_eff, 128), in_map),
                pl.BlockSpec((tile_eff, 128), in_map),
                pl.BlockSpec((tile_eff, 128), in_map),
            ],
            out_specs=pl.BlockSpec((None, 3, 128), lambda c, j: (c, 0, 0)),
        ),
        compiler_params=pltpu.CompilerParams(
            dimension_semantics=("parallel", "arbitrary")),
    )(est, gt, msk)

    # Cheap epilogue in the wrapper: combine per-core, cross-lane reduce, sqrt.
    sums = jnp.sum(partials, axis=(0, 2))               # [sum_d, sum_d2, count]
    cnt = sums[2]
    mean_d = sums[0] / cnt
    mean_d2 = sums[1] / cnt
    # Clamp: f32 rounding can push the variance-like term slightly negative.
    val = jnp.maximum(mean_d2 - alpha_image_loss * mean_d * mean_d, 0.0)
    # NOTE: an all-zero mask gives cnt == 0 -> NaN, same as the PyTorch reference.
    return silog_loss_weight * jnp.sqrt(val) * 10.0


def _reference(depth_est, depth_gt, mask, weight, alpha):
    m = mask.astype(bool)
    est = jnp.where(m, depth_est, 1.0)
    gt = jnp.where(m, depth_gt, 1.0)
    d = jnp.where(m, jnp.log(est) - jnp.log(gt), 0.0)
    n = m.sum().astype(jnp.float32)
    mean_d2 = (d * d).sum() / n
    mean_d = d.sum() / n
    return weight * jnp.sqrt(mean_d2 - alpha * mean_d ** 2) * 10.0


if __name__ == "__main__":
    key = jax.random.PRNGKey(0)
    k1, k2, k3 = jax.random.split(key, 3)

    B, C, H, W = 2, 1, 16, 16
    depth_est = jax.random.uniform(k1, (B, C, H, W), jnp.float32, 0.1, 10.0)
    depth_gt = jax.random.uniform(k2, (B, C, H, W), jnp.float32, 0.1, 10.0)
    mask = jax.random.uniform(k3, (B, C, H, W), jnp.float32) > 0.3  # bool mask

    silog_loss_weight = 1.0
    alpha_image_loss = 0.85

    loss = silog_loss(depth_est, depth_gt, mask,
                      silog_loss_weight=silog_loss_weight,
                      alpha_image_loss=alpha_image_loss,
                      depth_min_eval=1e-3)
    loss = jax.block_until_ready(loss)

    ref = _reference(depth_est, depth_gt, mask,
                     silog_loss_weight, alpha_image_loss)
    assert jnp.isfinite(loss), "kernel produced non-finite loss"
    assert jnp.allclose(loss, ref, rtol=1e-5, atol=1e-5), (loss, ref)
    print("KERNEL_OK")
</pallas_src>

<mosaic_0001>
module attributes {stable_mosaic.version = 11 : i64} {
  func.func @_silog_partials_kernel(%arg0: i32, %arg1: i32, %arg2: memref<32x128xf32, #tpu.memory_space<vmem>>, %arg3: memref<32x128xf32, #tpu.memory_space<vmem>>, %arg4: memref<32x128xi8, #tpu.memory_space<vmem>>, %arg5: memref<1x3x128xf32, #tpu.memory_space<vmem>>) attributes {dimension_semantics = [#tpu.dimension_semantics<parallel>, #tpu.dimension_semantics<arbitrary>], iteration_bounds = array<i64: 2, 1>, scalar_prefetch = 0 : i64, scratch_operands = 0 : i64, tpu.core_type = #tpu.core_type<tc>, window_params = [{transform_indices = @transform_0, window_bounds = array<i64: 32, 128>}, {transform_indices = @transform_1, window_bounds = array<i64: 32, 128>}, {transform_indices = @transform_2, window_bounds = array<i64: 32, 128>}, {transform_indices = @transform_3, window_bounds = array<i64: 1, 3, 128>}]} {
    %c0_i32 = arith.constant 0 : i32
    %0 = arith.cmpi eq, %arg1, %c0_i32 : i32
    %1 = arith.extui %0 : i1 to i32
    %c0_i32_0 = arith.constant 0 : i32
    %2 = arith.cmpi ne, %1, %c0_i32_0 : i32
    scf.if %2 {
      %cst_27 = arith.constant 0.000000e+00 : f32
      %51 = vector.broadcast %cst_27 : f32 to vector<3x128xf32>
      %c0_28 = arith.constant 0 : index
      %c0_29 = arith.constant 0 : index
      %c0_30 = arith.constant 0 : index
      %52 = vector.load %arg5[%c0_28, %c0_29, %c0_30] : memref<1x3x128xf32, #tpu.memory_space<vmem>>, vector<1x3x128xf32>
      %53 = vector.shape_cast %52 : vector<1x3x128xf32> to vector<3x128xf32>
      %54 = vector.shape_cast %51 : vector<3x128xf32> to vector<1x3x128xf32>
      tpu.vector_store %arg5[%c0_28, %c0_29, %c0_30], %54 {strides = array<i32>} : memref<1x3x128xf32, #tpu.memory_space<vmem>>, vector<1x3x128xf32>,
    } else {
    }
    %c0 = arith.constant 0 : index
    %c0_1 = arith.constant 0 : index
    %3 = vector.load %arg4[%c0, %c0_1] : memref<32x128xi8, #tpu.memory_space<vmem>>, vector<32x128xi8>
    %c0_i8 = arith.constant 0 : i8
    %4 = vector.broadcast %c0_i8 : i8 to vector<32x128xi8>
    %5 = arith.cmpi ne, %3, %4 : vector<32x128xi8>
    %c1_i32 = arith.constant 1 : i32
    %6 = arith.muli %arg0, %c1_i32 : i32
    %7 = arith.addi %6, %arg1 : i32
    %c32_i32 = arith.constant 32 : i32
    %8 = arith.muli %7, %c32_i32 : i32
    %9 = tpu.iota {dimensions = array<i32: 0>} : vector<32x128xi32>
    %10 = vector.broadcast %8 : i32 to vector<32x128xi32>
    %11 = arith.addi %10, %9 : vector<32x128xi32>
    %c32_i32_2 = arith.constant 32 : i32
    %12 = vector.broadcast %c32_i32_2 : i32 to vector<32x128xi32>
    %13 = arith.cmpi slt, %11, %12 : vector<32x128xi32>
    %14 = arith.andi %5, %13 : vector<32x128xi1>
    %c0_3 = arith.constant 0 : index
    %c0_4 = arith.constant 0 : index
    %15 = vector.load %arg2[%c0_3, %c0_4] : memref<32x128xf32, #tpu.memory_space<vmem>>, vector<32x128xf32>
    %cst = arith.constant 1.000000e+00 : f32
    %16 = vector.broadcast %cst : f32 to vector<32x128xf32>
    %17 = arith.select %14, %15, %16 : vector<32x128xi1>, vector<32x128xf32>
    %c0_5 = arith.constant 0 : index
    %c0_6 = arith.constant 0 : index
    %18 = vector.load %arg3[%c0_5, %c0_6] : memref<32x128xf32, #tpu.memory_space<vmem>>, vector<32x128xf32>
    %cst_7 = arith.constant 1.000000e+00 : f32
    %19 = vector.broadcast %cst_7 : f32 to vector<32x128xf32>
    %20 = arith.select %14, %18, %19 : vector<32x128xi1>, vector<32x128xf32>
    %21 = math.log %17 : vector<32x128xf32>
    %22 = math.log %20 : vector<32x128xf32>
    %23 = arith.subf %21, %22 : vector<32x128xf32>
    %c0_8 = arith.constant 0 : index
    %c0_9 = arith.constant 0 : index
    %c0_10 = arith.constant 0 : index
    %24 = vector.load %arg5[%c0_8, %c0_9, %c0_10] : memref<1x3x128xf32, #tpu.memory_space<vmem>>, vector<1x1x128xf32>
    %25 = vector.shape_cast %24 : vector<1x1x128xf32> to vector<1x128xf32>
    %cst_11 = arith.constant dense<0.000000e+00> : vector<128xf32>
    %26 = vector.multi_reduction <add>, %23, %cst_11 [0] : vector<32x128xf32> to vector<128xf32>
    %27 = vector.shape_cast %26 : vector<128xf32> to vector<1x128xf32>
    %28 = arith.addf %25, %27 : vector<1x128xf32>
    %c0_12 = arith.constant 0 : index
    %c0_13 = arith.constant 0 : index
    %c0_14 = arith.constant 0 : index
    %29 = vector.load %arg5[%c0_12, %c0_13, %c0_14] : memref<1x3x128xf32, #tpu.memory_space<vmem>>, vector<1x1x128xf32>
    %30 = vector.shape_cast %29 : vector<1x1x128xf32> to vector<1x128xf32>
    %31 = vector.shape_cast %28 : vector<1x128xf32> to vector<1x1x128xf32>
    tpu.vector_store %arg5[%c0_12, %c0_13, %c0_14], %31 {strides = array<i32>} : memref<1x3x128xf32, #tpu.memory_space<vmem>>, vector<1x1x128xf32>,
    %c0_15 = arith.constant 0 : index
    %c1 = arith.constant 1 : index
    %c0_16 = arith.constant 0 : index
    %32 = vector.load %arg5[%c0_15, %c1, %c0_16] : memref<1x3x128xf32, #tpu.memory_space<vmem>>, vector<1x1x128xf32>
    %33 = vector.shape_cast %32 : vector<1x1x128xf32> to vector<1x128xf32>
    %34 = arith.mulf %23, %23 : vector<32x128xf32>
    %cst_17 = arith.constant dense<0.000000e+00> : vector<128xf32>
    %35 = vector.multi_reduction <add>, %34, %cst_17 [0] : vector<32x128xf32> to vector<128xf32>
    %36 = vector.shape_cast %35 : vector<128xf32> to vector<1x128xf32>
    %37 = arith.addf %33, %36 : vector<1x128xf32>
    %c0_18 = arith.constant 0 : index
    %c1_19 = arith.constant 1 : index
    %c0_20 = arith.constant 0 : index
    %38 = vector.load %arg5[%c0_18, %c1_19, %c0_20] : memref<1x3x128xf32, #tpu.memory_space<vmem>>, vector<1x1x128xf32>
    %39 = vector.shape_cast %38 : vector<1x1x128xf32> to vector<1x128xf32>
    %40 = vector.shape_cast %37 : vector<1x128xf32> to vector<1x1x128xf32>
    tpu.vector_store %arg5[%c0_18, %c1_19, %c0_20], %40 {strides = array<i32>} : memref<1x3x128xf32, #tpu.memory_space<vmem>>, vector<1x1x128xf32>,
    %c0_21 = arith.constant 0 : index
    %c2 = arith.constant 2 : index
    %c0_22 = arith.constant 0 : index
    %41 = vector.load %arg5[%c0_21, %c2, %c0_22] : memref<1x3x128xf32, #tpu.memory_space<vmem>>, vector<1x1x128xf32>
    %42 = vector.shape_cast %41 : vector<1x1x128xf32> to vector<1x128xf32>
    %43 = arith.extui %14 : vector<32x128xi1> to vector<32x128xi32>
    %44 = arith.sitofp %43 : vector<32x128xi32> to vector<32x128xf32>
    %cst_23 = arith.constant dense<0.000000e+00> : vector<128xf32>
    %45 = vector.multi_reduction <add>, %44, %cst_23 [0] : vector<32x128xf32> to vector<128xf32>
    %46 = vector.shape_cast %45 : vector<128xf32> to vector<1x128xf32>
    %47 = arith.addf %42, %46 : vector<1x128xf32>
    %c0_24 = arith.constant 0 : index
    %c2_25 = arith.constant 2 : index
    %c0_26 = arith.constant 0 : index
    %48 = vector.load %arg5[%c0_24, %c2_25, %c0_26] : memref<1x3x128xf32, #tpu.memory_space<vmem>>, vector<1x1x128xf32>
    %49 = vector.shape_cast %48 : vector<1x1x128xf32> to vector<1x128xf32>
    %50 = vector.shape_cast %47 : vector<1x128xf32> to vector<1x1x128xf32>
    tpu.vector_store %arg5[%c0_24, %c2_25, %c0_26], %50 {strides = array<i32>} : memref<1x3x128xf32, #tpu.memory_space<vmem>>, vector<1x1x128xf32>,
    return
  }
  func.func @transform_0(%arg0: i32, %arg1: i32) -> (i32, i32) {
    %c1_i32 = arith.constant 1 : i32
    %0 = arith.muli %arg0, %c1_i32 : i32
    %1 = arith.addi %0, %arg1 : i32
    %c0_i32 = arith.constant 0 : i32
    %2 = arith.minsi %1, %c0_i32 : i32
    %c0_i32_0 = arith.constant 0 : i32
    %c0_i32_1 = arith.constant 0 : i32
    return %2, %c0_i32_0 : i32, i32
  }
  func.func @transform_1(%arg0: i32, %arg1: i32) -> (i32, i32) {
    %c1_i32 = arith.constant 1 : i32
    %0 = arith.muli %arg0, %c1_i32 : i32
    %1 = arith.addi %0, %arg1 : i32
    %c0_i32 = arith.constant 0 : i32
    %2 = arith.minsi %1, %c0_i32 : i32
    %c0_i32_0 = arith.constant 0 : i32
    %c0_i32_1 = arith.constant 0 : i32
    return %2, %c0_i32_0 : i32, i32
  }
  func.func @transform_2(%arg0: i32, %arg1: i32) -> (i32, i32) {
    %c1_i32 = arith.constant 1 : i32
    %0 = arith.muli %arg0, %c1_i32 : i32
    %1 = arith.addi %0, %arg1 : i32
    %c0_i32 = arith.constant 0 : i32
    %2 = arith.minsi %1, %c0_i32 : i32
    %c0_i32_0 = arith.constant 0 : i32
    %c0_i32_1 = arith.constant 0 : i32
    return %2, %c0_i32_0 : i32, i32
  }
  func.func @transform_3(%arg0: i32, %arg1: i32) -> (i32, i32, i32) {
    %c0_i32 = arith.constant 0 : i32
    %c0_i32_0 = arith.constant 0 : i32
    %c0_i32_1 = arith.constant 0 : i32
    return %arg0, %c0_i32, %c0_i32_0 : i32, i32, i32
  }
}

</mosaic_0001>

<bundles_post_ra>
// kernel: tpu_custom_call.1
= control target key start
LH: loop header
LB: loop body
LE: loop exit
PB: predicated region body
PF: predicated region fallthrough
CT: control target
= control target key end

     0   :  { %8 = vsyncpa [#allocation3], 0  ;;  %s1101_s0 = inlined_call_operand.hbm [shape: f32[32,128], index: 0, kind: input, shape index: {}]   ;;  %s1102_s1 = inlined_call_operand.hbm [shape: f32[32,128], index: 1, kind: input, shape index: {}]   ;;  %s1103_s2 = inlined_call_operand.hbm [shape: s8[32,128], index: 2, kind: input, shape index: {}]   ;;  %s1104_s3 = inlined_call_operand.vmem [shape: f32[2,3,128], index: 3, kind: output, shape index: {}]  }
   0x1   :  { %10 = vsyncpa [#allocation3 + $0x1], 0 }
   0x2   :  { %11 = vsyncpa [#allocation5], 0 }
   0x3   :  { %13 = vsyncpa [#allocation5 + $0x1], 0  ;;  %s869_s12 = smov 0   ;;  %s871_s13 = smov 0  }
   0x4   :  { %s873_s14 = smov 0   ;;  %s875_s15 = smov 0  }
   0x5   :  { %s877_s16 = smov 0  }
   0x6 LB: > { %s588_s17 = sadd.s32 4294967295, %s840_s16   ;;  %s31_s18 = sadd.s32 1, %s836_s15  ;;  %s840_s16 = sphi %s877_s16, %s19_s16   ;;  %s836_s15 = sphi %s875_s15, %s1127_s15   ;;  %s832_s14 = sphi %s873_s14, %s1126_s14   ;;  %s828_s13 = sphi %s871_s13, %s1091_s13   ;;  %s824_s12 = sphi %s869_s12, %s1125_s12  }
   0x7   : > { %p33_p0 = scmp.ge.s32.totalorder %s31_s18, 2  ;;  %p821_p1 = scmp.ne.s32.totalorder %s828_s13, 0 }
   0x8   : > { %p52_p2 = scmp.eq.s32.totalorder %s840_s16, 0  ;;  %p57_p3 = scmp.ne.s32.totalorder %s828_s13, %s824_s12 }
   0x9   : > { %s1129_s18 = smov (%p33_p0, %s31_s18), 0  ;;  %p58_p4 = scmp.eq.s32.totalorder %s588_s17, 0 }
   0xa   : > { %p53_p5 = por %p821_p1, %p52_p2  ;;  %p630_p7 = scmp.lt.s32.totalorder %s840_s16, 2 }
   0xb   : > { %p901_p6 = por %p58_p4, %p57_p3  ;;  %s195_s21 = sand.u32 1, %s840_s16  }
   0xc   : > { %p906_p8 = pnand %p630_p7, %p53_p5  ;;  %s842_s22 = smov [#allocation4]  }
   0xd   : > { %s1108_s19 = scalar_select %p901_p6, 1, 0 }
   0xe   : > { %s1109_s20 = scalar_select %p906_p8, 1, 0 }
   0xf   : > { %s209_s23 = sshll.u32 %s842_s22, 4  ;;  %s914_s24 = scalar_lea.sflag [#allocation5], %s195_s21  ;;  %s911_s23 = int_to_ptr.vmem [resolvable:$true] %s209_s23 }
  0x10   : > { %s699_s27 = scalar_lea.hbm %s1102_s1, 512  ;;  %p924_p11 = pneg %p906_p8 }
  0x11   : > { %p700_p10 = scmp.ne.s32.totalorder %s1102_s1, %s699_s27  ;;  %p706_p0 = scmp.lt.u32.totalorder %s699_s27, %s699_s27 }
  0x12   : > { %p708_p1 = scmp.lt.u32.totalorder %s699_s27, %s1102_s1 }
  0x13   : > { %p702_p12 = pnand %p924_p11, %p700_p10 }
  0x14   : > { %p709_p2 = por %p708_p1, %p706_p0 }
  0x15   : > { %p703_p13 = pneg %p702_p12 }
  0x17   : > { %p710_p3 = pnand %p709_p2, %p703_p13 }
  0x19   : > { %713 = shalt.err (!%p710_p3)
}
  0x1a   : > { %s714_s6 = scalar_lea.vmem %s911_s23, 512  ;;  %s721_s7 = scalar_lea.vmem %s911_s23, 1024 }
  0x1b   : > { %p715_p4 = scmp.ne.s32.totalorder %s911_s23, %s714_s6  ;;  %p722_p10 = scmp.lt.s32.totalorder %s911_s23, %s911_s23 }
  0x1c   : > { %p723_p12 = scmp.lt.s32.totalorder %s721_s7, %s714_s6 }
  0x1d   : > { %p717_p5 = pnand %p715_p4, %p924_p11 }
  0x1e   : > { %p724_p9 = por %p723_p12, %p722_p10 }
  0x1f   : > { %p718_p7 = pneg %p717_p5 }
  0x21   : > { %p725_p6 = pnand %p724_p9, %p718_p7 }
  0x23   : > { %728 = shalt.err (!%p725_p6)
}
  0x24   : > { %s843_s8 = smov 128   ;;  %s844_s9 = smov 8  }
  0x25   : > { %626 = dma.hbm_to_vmem [thread:$0]  (!%p906_p8), %s1102_s1, 512, %s911_s23, %s914_s24, %s843_s8, %s843_s8, %s844_s9  }
  0x26   : > { %p238_p13 = scmp.lt.s32.totalorder %s840_s16, 3  ;;  %p1111_p0 = scmp.ge.s32.totalorder %s840_s16, 1 }
  0x27   : > { %s845_s21 = smov [#allocation2]   ;;  %s729_s27 = scalar_lea.hbm %s1101_s0, 512 }
  0x28   : > { %p953_p9 = pnand %p1111_p0, %p238_p13  ;;  %s185_s22 = sshll.u32 %s845_s21, 4  ;;  %s186_s22 = int_to_ptr.vmem [resolvable:$true] %s185_s22 }
  0x29   : > { %p730_p6 = scmp.ne.s32.totalorder %s1101_s0, %s729_s27  ;;  %p736_p3 = scmp.lt.u32.totalorder %s729_s27, %s729_s27 }
  0x2a   : > { %s1112_s12 = scalar_select %p953_p9, 1, 0 }
  0x2b   : > { %p732_p1 = pnand %p730_p6, %p924_p11  ;;  %p738_p4 = scmp.lt.u32.totalorder %s729_s27, %s1101_s0 }
  0x2d   : > { %p733_p2 = pneg %p732_p1  ;;  %p739_p5 = por %p738_p4, %p736_p3 }
  0x2f   : > { %p740_p7 = pnand %p739_p5, %p733_p2 }
  0x31   : > { %743 = shalt.err (!%p740_p7)
}
  0x32   : > { %s744_s5 = scalar_lea.vmem %s186_s22, 512  ;;  %s751_s6 = scalar_lea.vmem %s186_s22, 1024 }
  0x33   : > { %p745_p10 = scmp.ne.s32.totalorder %s186_s22, %s744_s5  ;;  %p752_p0 = scmp.lt.s32.totalorder %s186_s22, %s186_s22 }
  0x34   : > { %p753_p9 = scmp.lt.s32.totalorder %s751_s6, %s744_s5 }
  0x35   : > { %p747_p12 = pnand %p745_p10, %p924_p11 }
  0x36   : > { %p754_p8 = por %p753_p9, %p752_p0 }
  0x37   : > { %p748_p13 = pneg %p747_p12 }
  0x39   : > { %p755_p6 = pnand %p754_p8, %p748_p13 }
  0x3b   : > { %758 = shalt.err (!%p755_p6)
}
  0x3c   : > { %p1113_p1 = scmp.ne.s32.totalorder %s1109_s20, 0  ;;  %s846_s11 = smov [#allocation6]  }
  0x3d   : > { %s233_s21 = sshll.u32 %s846_s11, 4  ;;  %s759_s27 = scalar_lea.hbm %s1103_s2, 128  ;;  %s234_s21 = int_to_ptr.vmem [resolvable:$true] %s233_s21 }
  0x3e   : > { %623 = dma.hbm_to_vmem [thread:$0]  (!%p1113_p1), %s1101_s0, 512, %s186_s22, [#allocation3], %s843_s8, %s843_s8, %s844_s9  }
  0x3f   : > { %p760_p8 = scmp.ne.s32.totalorder %s1103_s2, %s759_s27  ;;  %p766_p3 = scmp.lt.u32.totalorder %s759_s27, %s759_s27 }
  0x40   : > { %p768_p4 = scmp.lt.u32.totalorder %s759_s27, %s1103_s2 }
  0x41   : > { %p762_p9 = pnand %p760_p8, %p924_p11 }
  0x42   : > { %p769_p5 = por %p768_p4, %p766_p3 }
  0x43   : > { %p763_p2 = pneg %p762_p9 }
  0x45   : > { %p770_p7 = pnand %p769_p5, %p763_p2 }
  0x47   : > { %773 = shalt.err (!%p770_p7)
}
  0x48   : > { %s774_s8 = scalar_lea.vmem %s234_s21, 128  ;;  %s781_s9 = scalar_lea.vmem %s234_s21, 256 }
  0x49   : > { %p775_p10 = scmp.ne.s32.totalorder %s234_s21, %s774_s8  ;;  %p782_p0 = scmp.lt.s32.totalorder %s234_s21, %s234_s21 }
  0x4a   : > { %p783_p6 = scmp.lt.s32.totalorder %s781_s9, %s774_s8 }
  0x4b   : > { %p777_p12 = pnand %p775_p10, %p924_p11 }
  0x4c   : > { %p784_p1 = por %p783_p6, %p782_p0 }
  0x4d   : > { %p778_p13 = pneg %p777_p12 }
  0x4f   : > { %p785_p8 = pnand %p784_p1, %p778_p13 }
  0x51   : > { %788 = shalt.err (!%p785_p8)
}
  0x52   : > { %p1114_p9 = scmp.ne.s32.totalorder %s1109_s20, 0  ;;  %p1115_p2 = scmp.ne.s32.totalorder %s1112_s12, 0 }
  0x53   : > { %s1000_s30 = sand.u32 (!%p1115_p2), 1, %s828_s13   ;;  %p1116_p11 = scmp.ne.s32.totalorder (!%p1115_p2), %s1108_s19, 0 }
  0x54   : > { %629 = dma.hbm_to_vmem [thread:$0]  (!%p1114_p9), %s1103_s2, 128, %s234_s21, %s914_s24  }
  0x55   : > { %242 = sbr.rel (%p1115_p2) target bundleno = 176 (0xb0), region = 32  ;;  %s601_s6 = sshll.u32 (!%p1115_p2), %s1000_s30, 5 }
  0x56   : > { %s245_s7 = scalar_lea.sflag (!%p1115_p2), [#allocation3], %s1000_s30  ;;  %s1004_s10 = scalar_lea.vmem (!%p1115_p2), [#allocation2], %s601_s6 }
  0x5c   : > { %814 = dma.done.wait (%p1116_p11), %s245_s7, 512  }
  0x5d   : > { %816 = vsyncadd (%p1116_p11), %s245_s7, 4294966784  ;;  %s253_s20 = sand.u32 1, %s588_s17   ;;  %s1012_s12 = scalar_lea.vmem [#allocation4], %s601_s6 }
  0x5e   : > { %s254_s24 = scalar_lea.sflag [#allocation5], %s253_s20 }
  0x5f   : > { %818 = dma.done.wait (%p1116_p11), %s254_s24, 640  }
  0x60   : > { %820 = vsyncadd (%p1116_p11), %s254_s24, 4294966656  ;;  %p309_p1 = scmp.lt.s32.totalorder %s832_s14, 1  ;;  %v324_v0 = vlaneseq  ;;  %s605_s11 = sshll.u32 %s832_s14, 5  ;;  %v847_v7 = vmov 0.0   ;;  %v848_v11 = vmov 0   ;;  %v359_v40 = vld [vmem:[%s1004_s10] sm:$0xff] }
  0x61   : > { %v329_v2 = vstv %s605_s11  ;;  %v360_v41 = vld [vmem:[%s1004_s10 + $0x8] sm:$0xff]  ;;  %v361_v46 = vld [vmem:[%s1004_s10 + $0x10] sm:$0xff]  ;;  %v362_v48 = vld [vmem:[%s1004_s10 + $0x18] sm:$0xff] }
  0x62   : > { %s1131_s14 = smov (!%p309_p1, %s832_s14), 1  ;;  %v325_v1 = vshrl.u32 %v324_v0, 7  ;;  %v396_v55 = vld [vmem:[%s1012_s12] sm:$0xff]  ;;  %v397_v57 = vld [vmem:[%s1012_s12 + $0x8] sm:$0xff]  ;;  %v398_v59 = vld [vmem:[%s1012_s12 + $0x10] sm:$0xff] }
  0x63   : > { %s604_s21 = sshll.u32 %s1131_s14, 2  ;;  %s603_s14 = sshll.u32 %s1000_s30, 3  ;;  %v399_v62 = vld [vmem:[%s1012_s12 + $0x18] sm:$0xff] }
  0x64   : > { %v326_v3 = vadd.s32 8, %v325_v1  ;;  %v327_v4 = vadd.s32 16, %v325_v1  ;;  %v328_v5 = vadd.s32 24, %v325_v1  ;;  %v330_v6 = vadd.s32 %v329_v2, %v325_v1  ;;  %s1024_s26 = scalar_lea.vmem %s1104_s3, %s604_s21  ;;  %s266_s19 = scalar_lea.vmem [#allocation6], %s603_s14 }
  0x65   : > { %319 = vst [vmem:[%s1024_s26] sm:$0x7] %v847_v7  ;;  %v320_v21 = vld [vmem:[%s266_s19] sm:$0xff] }
  0x66   : > { %v331_v8 = vadd.s32 %v329_v2, %v326_v3  ;;  %v332_v9 = vadd.s32 %v329_v2, %v327_v4  ;;  %v333_v10 = vadd.s32 %v329_v2, %v328_v5  ;;  %vm334_vm0 = vcmp.lt.s32.totalorder %v330_v6, 32 }
  0x67   : > { %vm338_vm1 = vmpackc.low %vm334_vm0, %vm334_vm0  ;;  %vm321_vm12 = vnez %v320_v21 }
  0x68   : > { %vm335_vm2 = vcmp.lt.s32.totalorder %v331_v8, 32  ;;  %vm336_vm3 = vcmp.lt.s32.totalorder %v332_v9, 32  ;;  %vm339_vm4 = vmpackc.even %vm338_vm1, %vm338_vm1  ;;  %vm337_vm6 = vcmp.lt.s32.totalorder %v333_v10, 32 }
  0x69   : > { %vm340_vm5 = vmpackc.low %vm335_vm2, %vm335_vm2  ;;  %v346_v12 = vsel %vm339_vm4, 16843009, %v848_v11 }
  0x6a   : > { %vm341_vm7 = vmpackc.even %vm340_vm5, %vm340_vm5  ;;  %v350_v14 = vunpack.c.0.s8 %v346_v12 }
  0x6b   : > { %vm342_vm8 = vmpackc.low %vm336_vm3, %vm336_vm3  ;;  %v347_v13 = vsel %vm341_vm7, 16843009, %v848_v11 }
  0x6c   : > { %vm343_vm9 = vmpackc.even %vm342_vm8, %vm342_vm8  ;;  %v351_v15 = vunpack.c.0.s8 %v347_v13 }
  0x6d   : > { %vm344_vm10 = vmpackc.low %vm337_vm6, %vm337_vm6  ;;  %v348_v16 = vsel %vm343_vm9, 16843009, %v848_v11 }
  0x6e   : > { %vm345_vm11 = vmpackc.even %vm344_vm10, %vm344_vm10  ;;  %v352_v17 = vunpack.c.0.s8 %v348_v16  ;;  %v354_v20 = vpack.c.b16 %v351_v15, %v350_v14 }
  0x6f   : > { %v349_v18 = vsel %vm345_vm11, 16843009, %v848_v11 }
  0x70   : > { %v353_v19 = vunpack.c.0.s8 %v349_v18 }
  0x72   : > { %v355_v22 = vpack.c.b16 %v353_v19, %v352_v17 }
  0x74   : > { %v356_v23 = vpack.c.b8 %v355_v22, %v354_v20 }
  0x76   : > { %vm357_vm13 = vnez %v356_v23 }
  0x77   : > { %vm358_vm14 = vmand %vm321_vm12, %vm357_vm13 }
  0x78   : > { %v363_v24 = vsel %vm358_vm14, 16843009, %v848_v11 }
  0x79   : > { %v364_v25 = vunpack.c.0.s8 %v363_v24  ;;  %v365_v26 = vunpack.c.1.s8 %v363_v24  ;;  %v366_v27 = vunpack.c.2.s8 %v363_v24  ;;  %v367_v28 = vunpack.c.3.s8 %v363_v24 }
  0x7b   : > { %v368_v29 = vpack.c.b16 %v364_v25, %v364_v25  ;;  %v370_v30 = vpack.c.b16 %v365_v26, %v365_v26  ;;  %v372_v31 = vpack.c.b16 %v366_v27, %v366_v27  ;;  %v374_v32 = vpack.c.b16 %v367_v28, %v367_v28  ;;  %v452_v26 = vld [vmem:[%s1024_s26 + $0x2] sm:$0x1] }
  0x7d   : > { %v369_v33 = vpack.c.b8 %v368_v29, %v368_v29  ;;  %v371_v34 = vpack.c.b8 %v370_v30, %v370_v30  ;;  %v373_v35 = vpack.c.b8 %v372_v31, %v372_v31  ;;  %v375_v36 = vpack.c.b8 %v374_v32, %v374_v32 }
  0x7f   : > { %vm376_vm15 = vnez %v369_v33  ;;  %vm377_vm0 = vnez %v371_v34  ;;  %vm378_vm1 = vnez %v373_v35  ;;  %vm379_vm2 = vnez %v375_v36 }
  0x80   : > { %v380_v37 = vsel %vm376_vm15, 16843009, %v848_v11  ;;  %v381_v38 = vsel %vm377_vm0, 16843009, %v848_v11  ;;  %v382_v39 = vsel %vm378_vm1, 16843009, %v848_v11 }
  0x81   : > { %v383_v42 = vsel %vm379_vm2, 16843009, %v848_v11  ;;  %v384_v43 = vunpack.c.0.s8 %v380_v37  ;;  %v385_v44 = vunpack.c.0.s8 %v381_v38  ;;  %v386_v45 = vunpack.c.0.s8 %v382_v39 }
  0x82   : > { %v387_v47 = vunpack.c.0.s8 %v383_v42 }
  0x83   : > { %vm1033_vm3 = vcmp.ne.s32.totalorder %v384_v43, 0  ;;  %vm1037_vm4 = vcmp.ne.s32.totalorder %v385_v44, 0  ;;  %vm1041_vm5 = vcmp.ne.s32.totalorder %v386_v45, 0 }
  0x84   : > { %vm1045_vm6 = vcmp.ne.s32.totalorder %v387_v47, 0  ;;  %v392_v53 = vsel %vm1033_vm3, %v359_v40, 1.0  ;;  %v393_v54 = vsel %vm1037_vm4, %v360_v41, 1.0  ;;  %v394_v56 = vsel %vm1041_vm5, %v361_v46, 1.0 }
  0x85   : > { %v395_v58 = vsel %vm1045_vm6, %v362_v48, 1.0  ;;  %683 = vlog2.f32 %v392_v53  ;;  %v606_v60 = vsel %vm1033_vm3, 1.0, %v847_v7  ;;  %v607_v61 = vsel %vm1037_vm4, 1.0, %v847_v7 }
  0x86   : > { %v400_v63 = vsel %vm1033_vm3, %v396_v55, 1.0  ;;  %685 = vlog2.f32 %v393_v54  ;;  %v608_v0 = vsel %vm1041_vm5, 1.0, %v847_v7  ;;  %v461_v1 = vadd.f32 %v607_v61, %v606_v60  ;;  %v424_v55 = vld [vmem:[%s1024_s26] sm:$0x1] }
  0x87   : > { %v401_v2 = vsel %vm1037_vm4, %v397_v57, 1.0  ;;  %687 = vlog2.f32 %v394_v56  ;;  %v609_v3 = vsel %vm1045_vm6, 1.0, %v847_v7  ;;  %v402_v4 = vsel %vm1041_vm5, %v398_v59, 1.0 }
  0x88   : > { %689 = vlog2.f32 %v395_v58  ;;  %v462_v5 = vadd.f32 %v608_v0, %v461_v1  ;;  %v403_v6 = vsel %vm1045_vm6, %v399_v62, 1.0  ;;  %v436_v58 = vld [vmem:[%s1024_s26 + $0x1] sm:$0x1] }
  0x89   : > { %691 = vlog2.f32 %v400_v63 }
  0x8a   : > { %693 = vlog2.f32 %v401_v2  ;;  %v463_v8 = vadd.f32 %v609_v3, %v462_v5 }
  0x8b   : > { %695 = vlog2.f32 %v402_v4 }
  0x8c   : > { %697 = vlog2.f32 %v403_v6  ;;  %v464_v9 = vrot.slane %v463_v8, 4 }
  0x8e   : > { %v465_v10 = vadd.f32 %v464_v9, %v463_v8 }
  0x8f   : > { %v684_v11 = vpop.eup %683 }
  0x90   : > { %v686_v12 = vpop.eup %685  ;;  %v466_v13 = vrot.slane %v465_v10, 2  ;;  %v405_v15 = vmul.f32 0.6931472, %v684_v11 }
  0x91   : > { %v688_v7 = vpop.eup %687  ;;  %v407_v18 = vmul.f32 0.6931472, %v686_v12 }
  0x92   : > { %v690_v14 = vpop.eup %689  ;;  %v467_v16 = vadd.f32 %v466_v13, %v465_v10  ;;  %v409_v20 = vmul.f32 0.6931472, %v688_v7 }
  0x93   : > { %v692_v17 = vpop.eup %691  ;;  %v411_v25 = vmul.f32 0.6931472, %v690_v14 }
  0x94   : > { %v694_v19 = vpop.eup %693  ;;  %v413_v21 = vmul.f32 0.6931472, %v692_v17  ;;  %v468_v22 = vrot.slane %v467_v16, 1 }
  0x95   : > { %v696_v23 = vpop.eup %695  ;;  %v415_v24 = vmul.f32 0.6931472, %v694_v19 }
  0x96   : > { %v698_v27 = vpop.eup %697  ;;  %v417_v28 = vmul.f32 0.6931472, %v696_v23  ;;  %v420_v29 = vsub.f32 %v405_v15, %v413_v21  ;;  %v469_v30 = vadd.f32 %v468_v22, %v467_v16 }
  0x97   : > { %v419_v31 = vmul.f32 0.6931472, %v698_v27  ;;  %v421_v32 = vsub.f32 %v407_v18, %v415_v24 }
  0x98   : > { %v422_v33 = vsub.f32 %v409_v20, %v417_v28  ;;  %v437_v34 = vmul.f32 %v420_v29, %v420_v29  ;;  %v470_v35 = vadd.f32 %v469_v30, %v452_v26 }
  0x99   : > { %v423_v36 = vsub.f32 %v411_v25, %v419_v31  ;;  %v425_v37 = vadd.f32 %v421_v32, %v420_v29  ;;  %v438_v38 = vmul.f32 %v421_v32, %v421_v32 }
  0x9a   : > { %v439_v39 = vmul.f32 %v422_v33, %v422_v33  ;;  %471 = vst [vmem:[%s1024_s26 + $0x2] sm:$0x1] %v470_v35 }
  0x9b   : > { %v426_v40 = vadd.f32 %v425_v37, %v422_v33  ;;  %v440_v41 = vmul.f32 %v423_v36, %v423_v36  ;;  %v441_v42 = vadd.f32 %v438_v38, %v437_v34 }
  0x9d   : > { %v427_v43 = vadd.f32 %v426_v40, %v423_v36  ;;  %v442_v44 = vadd.f32 %v441_v42, %v439_v39 }
  0x9f   : > { %v428_v45 = vrot.slane %v427_v43, 4  ;;  %v443_v46 = vadd.f32 %v442_v44, %v440_v41 }
  0xa1   : > { %v429_v47 = vadd.f32 %v428_v45, %v427_v43  ;;  %v444_v48 = vrot.slane %v443_v46, 4 }
  0xa3   : > { %v430_v49 = vrot.slane %v429_v47, 2  ;;  %v445_v50 = vadd.f32 %v444_v48, %v443_v46 }
  0xa5   : > { %v431_v51 = vadd.f32 %v430_v49, %v429_v47  ;;  %v446_v52 = vrot.slane %v445_v50, 2 }
  0xa7   : > { %v432_v53 = vrot.slane %v431_v51, 1  ;;  %v447_v54 = vadd.f32 %v446_v52, %v445_v50 }
  0xa9   : > { %v433_v56 = vadd.f32 %v432_v53, %v431_v51  ;;  %v448_v57 = vrot.slane %v447_v54, 1 }
  0xab   : > { %v434_v59 = vadd.f32 %v433_v56, %v424_v55  ;;  %v449_v60 = vadd.f32 %v448_v57, %v447_v54 }
  0xad   : > { %435 = vst [vmem:[%s1024_s26] sm:$0x1] %v434_v59  ;;  %v450_v61 = vadd.f32 %v449_v60, %v436_v58 }
  0xaf   : > { %451 = vst [vmem:[%s1024_s26 + $0x1] sm:$0x1] %v450_v61 }
  0xb0 PF: > { %s19_s16 = sadd.s32 1, %s840_s16   ;;  %s1125_s12 = smov %s828_s13 }
  0xb1   : > { %p16_p3 = scmp.ge.s32.totalorder %s19_s16, 4   ;;  %s1091_s13 = smov 0  }
  0xb2   : > { %s1126_s14 = smov %s836_s15  ;;  %s1127_s15 = smov %s1129_s18 }
  0xb3   :  { %18 = sbr.rel (!%p16_p3) target bundleno = 6 (0x6), region = 100 }
  0xba   :  { %491 = vsyncpa [#allocation3], 1 }
  0xbb   :  { %493 = vsyncpa [#allocation3 + $0x1], 1 }
  0xbc   :  { %494 = vsyncpa [#allocation5], 1 }
  0xbd   :  { %496 = vsyncpa [#allocation5 + $0x1], 1 }

</bundles_post_ra>
